<compile_context>
chip_gen: v6e
topology: v6e:2x2x1
jax: 0.10.0
libtpu: 0.0.40
codegen_flags: <defaults>
</compile_context>

<pallas_src>
import jax
import jax.numpy as jnp
from jax import lax
from jax.experimental import pallas as pl
from jax.experimental.pallas import tpu as pltpu

STEPS = 3  # the module splits the temporal axis into exactly 3 features


def _round_up8(v):
    return max(8, ((int(v) + 7) // 8) * 8)


def _has_two_tensorcores():
    """True on v7x-class chips (2 TensorCores / chip); v5e / v6e have 1."""
    try:
        kind = jax.devices()[0].device_kind.lower()
    except Exception:
        return False
    return ("v7" in kind) or ("tpu7" in kind)


def _make_kernel(D, use_mxu_reduce):
    def kernel(feat_ref, pos_ref, out_ref):
        # feat_ref: [TB, 3*D]   pos_ref: [1, 3*D]   out_ref: [TB, 3*D]
        x = feat_ref[...].astype(jnp.float32) + pos_ref[...].astype(jnp.float32)

        # Static, 128-aligned lane slabs — zero-cost slicing.
        f1 = x[:, 0 * D:1 * D]
        f2 = x[:, 1 * D:2 * D]
        f3 = x[:, 2 * D:3 * D]

        if use_mxu_reduce:
            # v7x: HBM is fast enough that XLU rotate trees become the binding
            # slot; push the per-row lane reductions onto the idle MXU.
            ones_w = jnp.ones((D, 8), jnp.float32)

            def rsum(p):  # [TB, D] -> [TB, 1], f32 accumulation on the MXU
                r = jnp.dot(p, ones_w, preferred_element_type=jnp.float32)
                return r[:, 0:1]
        else:
            def rsum(p):  # XLU cross-lane reduction (fine while HBM-bound)
                return jnp.sum(p, axis=-1, keepdims=True)

        # --- 6 unique per-row reductions, each reused ----------------------
        n1 = rsum(f1 * f1)
        n2 = rsum(f2 * f2)
        n3 = rsum(f3 * f3)
        d12 = rsum(f1 * f2)
        d13 = rsum(f1 * f3)
        d23 = rsum(f2 * f3)

        # max(||f||, 1e-8) == sqrt(max(||f||^2, 1e-16)); rsqrt runs on the EUP.
        eps2 = jnp.float32(1e-16)
        r1 = lax.rsqrt(jnp.maximum(n1, eps2))
        r2 = lax.rsqrt(jnp.maximum(n2, eps2))
        r3 = lax.rsqrt(jnp.maximum(n3, eps2))

        c12 = d12 * (r1 * r2)   # cos(f1, f2) == cos(f2, f1)
        c13 = d13 * (r1 * r3)
        c23 = d23 * (r2 * r3)

        def agg(q, k1, k2, s1, s2):
            # softmax([s1, s2]) == [sigmoid(s1 - s2), 1 - sigmoid(s1 - s2)]
            w1 = jax.nn.sigmoid(s1 - s2)
            w2 = 1.0 - w1
            return q + w1 * k1 + w2 * k2

        # Direct, unmasked, 128-aligned slab stores (no concatenate temp);
        # each slab retires as soon as it is computed.
        out_ref[:, 0 * D:1 * D] = agg(f1, f2, f3, c12, c13).astype(out_ref.dtype)
        out_ref[:, 1 * D:2 * D] = agg(f2, f1, f3, c12, c23).astype(out_ref.dtype)
        out_ref[:, 2 * D:3 * D] = agg(f3, f1, f2, c13, c23).astype(out_ref.dtype)

    return kernel


def _choose_block_b(B, row_bytes, two_cores):
    """Rows per grid step: ~4 MiB of in+out per step (amortizes the ~0.35 us
    per-step overhead), capped so the double-buffered in+out working set stays
    well under every generation's default scoped VMEM, and split so that on
    v7x both TensorCores get work."""
    target_step_bytes = 4 * 1024 * 1024          # in + out streamed per step
    vmem_budget = 12 * 1024 * 1024               # < 16 MiB scoped default (v5e)
    block_b = target_step_bytes // (2 * row_bytes)
    block_b = min(block_b, vmem_budget // (4 * row_bytes))
    if two_cores and B > 8:
        # >= 2 grid blocks so dimension_semantics=("parallel",) shards across
        # the two TensorCores.
        block_b = min(block_b, _round_up8((B + 1) // 2))
    block_b = min(block_b, _round_up8(B))        # never larger than needed
    return max(8, (int(block_b) // 8) * 8)


def _vmem_limit_bytes(block_b, row_bytes):
    # double-buffered input + output blocks, plus the pos row and headroom;
    # capped at 32 MiB (half of v7x's 64 MiB physical VMEM).
    needed = 4 * block_b * row_bytes + 2 * row_bytes + (2 << 20)
    return int(min(32 * 1024 * 1024, max(16 * 1024 * 1024, needed)))


def feature_correlation(feat_in, pos_embedding, *, steps=STEPS,
                        block_b=None, reduce_via_mxu=None):
    """feat_in: [B*steps, D]   pos_embedding: [1, steps, D]  ->  [B*steps, D]"""
    BT, D = feat_in.shape
    assert BT % steps == 0, "batch*steps must be divisible by steps"
    assert steps == STEPS, "kernel is specialized to steps == 3"
    # TODO(synk): the PyTorch module allows any feat_size; this kernel requires
    # a lane-aligned D (multiple of 128) so slab loads/stores stay unmasked.
    assert D % 128 == 0, "feat_size must be a multiple of 128"
    B = BT // steps

    # Free row-major views: [B*steps, D] -> [B, steps*D] (lane-dense layout).
    x = feat_in.reshape(B, steps * D)
    pos = pos_embedding.reshape(1, steps * D)

    two_cores = _has_two_tensorcores()
    if reduce_via_mxu is None:
        reduce_via_mxu = two_cores        # only worth it on v7x

    row_bytes = steps * D * feat_in.dtype.itemsize
    if block_b is None:
        block_b = _choose_block_b(B, row_bytes, two_cores)
    block_b = max(8, (int(block_b) // 8) * 8)

    n_blocks = pl.cdiv(B, block_b)        # edge block is masked — no host pad

    out = pl.pallas_call(
        _make_kernel(D, reduce_via_mxu),
        out_shape=jax.ShapeDtypeStruct((B, steps * D), feat_in.dtype),
        grid_spec=pltpu.PrefetchScalarGridSpec(
            num_scalar_prefetch=0,
            grid=(n_blocks,),
            in_specs=[
                pl.BlockSpec((block_b, steps * D), lambda i: (i, 0)),
                pl.BlockSpec((1, steps * D), lambda i: (0, 0)),
            ],
            out_specs=pl.BlockSpec((block_b, steps * D), lambda i: (i, 0)),
        ),
        compiler_params=pltpu.CompilerParams(
            dimension_semantics=("parallel",),
            vmem_limit_bytes=_vmem_limit_bytes(block_b, row_bytes),
        ),
    )(x, pos)

    return out.reshape(B * steps, D)


def _reference(feat_in, pos_embedding, steps=STEPS):
    """Pure-JAX reference for correctness check."""
    BT, D = feat_in.shape
    B = BT // steps
    x = feat_in.reshape(B, steps, D) + pos_embedding
    f1, f2, f3 = x[:, 0, :], x[:, 1, :], x[:, 2, :]

    def cos(a, b):
        dot = jnp.sum(a * b, -1, keepdims=True)
        na = jnp.maximum(jnp.linalg.norm(a, axis=-1, keepdims=True), 1e-8)
        nb = jnp.maximum(jnp.linalg.norm(b, axis=-1, keepdims=True), 1e-8)
        return dot / (na * nb)

    def agg(q, k1, k2):
        w = jax.nn.softmax(jnp.concatenate([cos(q, k1), cos(q, k2)], -1), -1)
        return q + w[:, 0:1] * k1 + w[:, 1:2] * k2

    out = jnp.stack([agg(f1, f2, f3), agg(f2, f1, f3), agg(f3, f1, f2)], 1)
    return out.reshape(B * steps, D)


if __name__ == "__main__":
    steps = STEPS
    feat_size = 128

    key = jax.random.PRNGKey(0)
    k_feat, k_pos = jax.random.split(key)
    # deterministic stand-in for nn.Parameter(torch.randn(1, steps, feat_size))
    pos_embedding = jax.random.normal(k_pos, (1, steps, feat_size), dtype=jnp.float32)

    # Small shape, auto-config path (single block).
    B = 8
    feat_in = jax.random.normal(k_feat, (B * steps, feat_size), dtype=jnp.float32)
    out = jax.block_until_ready(feature_correlation(feat_in, pos_embedding))
    ref = _reference(feat_in, pos_embedding)
    assert out.shape == (B * steps, feat_size)
    assert jnp.allclose(out, ref, atol=1e-5, rtol=1e-5), "mismatch vs reference"

    # Multi-block path with a non-dividing edge block (no host pad/slice):
    # grid = cdiv(20, 8) = 3, last block partially out-of-bounds (masked store).
    B2 = 20
    feat_in2 = jax.random.normal(k_feat, (B2 * steps, feat_size), dtype=jnp.float32)
    ref2 = _reference(feat_in2, pos_embedding)
    out2 = jax.block_until_ready(
        feature_correlation(feat_in2, pos_embedding, block_b=8))
    assert out2.shape == (B2 * steps, feat_size)
    assert jnp.allclose(out2, ref2, atol=1e-5, rtol=1e-5), "mismatch (tiled/edge)"

    # MXU-reduction path (default on v7x) — validated on every chip, also with
    # an edge block (grid = cdiv(20, 16) = 2).
    out3 = jax.block_until_ready(
        feature_correlation(feat_in2, pos_embedding, block_b=16,
                            reduce_via_mxu=True))
    assert jnp.allclose(out3, ref2, atol=1e-5, rtol=1e-5), "mismatch (MXU reduce)"

    print("KERNEL_OK")
</pallas_src>

<mosaic_0001>
module attributes {stable_mosaic.version = 11 : i64} {
  func.func @kernel(%arg0: i32, %arg1: memref<8x384xf32, #tpu.memory_space<vmem>>, %arg2: memref<1x384xf32, #tpu.memory_space<vmem>>, %arg3: memref<8x384xf32, #tpu.memory_space<vmem>>) attributes {dimension_semantics = [#tpu.dimension_semantics<parallel>], iteration_bounds = array<i64: 1>, scalar_prefetch = 0 : i64, scratch_operands = 0 : i64, tpu.core_type = #tpu.core_type<tc>, window_params = [{transform_indices = @transform_0, window_bounds = array<i64: 8, 384>}, {pipeline_mode = #tpu.pipeline_mode<synchronous>, transform_indices = @transform_1, window_bounds = array<i64: 1, 384>}, {transform_indices = @transform_2, window_bounds = array<i64: 8, 384>}]} {
    %c0 = arith.constant 0 : index
    %c0_0 = arith.constant 0 : index
    %0 = vector.load %arg1[%c0, %c0_0] : memref<8x384xf32, #tpu.memory_space<vmem>>, vector<8x384xf32>
    %c0_1 = arith.constant 0 : index
    %c0_2 = arith.constant 0 : index
    %1 = vector.load %arg2[%c0_1, %c0_2] : memref<1x384xf32, #tpu.memory_space<vmem>>, vector<1x384xf32>
    %2 = vector.broadcast %1 : vector<1x384xf32> to vector<8x384xf32>
    %3 = arith.addf %0, %2 : vector<8x384xf32>
    %4 = vector.extract_strided_slice %3 {offsets = [0, 0], sizes = [8, 128], strides = [1, 1]} : vector<8x384xf32> to vector<8x128xf32>
    %5 = vector.extract_strided_slice %3 {offsets = [0, 128], sizes = [8, 128], strides = [1, 1]} : vector<8x384xf32> to vector<8x128xf32>
    %6 = vector.extract_strided_slice %3 {offsets = [0, 256], sizes = [8, 128], strides = [1, 1]} : vector<8x384xf32> to vector<8x128xf32>
    %7 = arith.mulf %4, %4 : vector<8x128xf32>
    %cst = arith.constant dense<0.000000e+00> : vector<8xf32>
    %8 = vector.multi_reduction <add>, %7, %cst [1] : vector<8x128xf32> to vector<8xf32>
    %9 = vector.shape_cast %8 : vector<8xf32> to vector<8x1xf32>
    %10 = arith.mulf %5, %5 : vector<8x128xf32>
    %cst_3 = arith.constant dense<0.000000e+00> : vector<8xf32>
    %11 = vector.multi_reduction <add>, %10, %cst_3 [1] : vector<8x128xf32> to vector<8xf32>
    %12 = vector.shape_cast %11 : vector<8xf32> to vector<8x1xf32>
    %13 = arith.mulf %6, %6 : vector<8x128xf32>
    %cst_4 = arith.constant dense<0.000000e+00> : vector<8xf32>
    %14 = vector.multi_reduction <add>, %13, %cst_4 [1] : vector<8x128xf32> to vector<8xf32>
    %15 = vector.shape_cast %14 : vector<8xf32> to vector<8x1xf32>
    %16 = arith.mulf %4, %5 : vector<8x128xf32>
    %cst_5 = arith.constant dense<0.000000e+00> : vector<8xf32>
    %17 = vector.multi_reduction <add>, %16, %cst_5 [1] : vector<8x128xf32> to vector<8xf32>
    %18 = vector.shape_cast %17 : vector<8xf32> to vector<8x1xf32>
    %19 = arith.mulf %4, %6 : vector<8x128xf32>
    %cst_6 = arith.constant dense<0.000000e+00> : vector<8xf32>
    %20 = vector.multi_reduction <add>, %19, %cst_6 [1] : vector<8x128xf32> to vector<8xf32>
    %21 = vector.shape_cast %20 : vector<8xf32> to vector<8x1xf32>
    %22 = arith.mulf %5, %6 : vector<8x128xf32>
    %cst_7 = arith.constant dense<0.000000e+00> : vector<8xf32>
    %23 = vector.multi_reduction <add>, %22, %cst_7 [1] : vector<8x128xf32> to vector<8xf32>
    %24 = vector.shape_cast %23 : vector<8xf32> to vector<8x1xf32>
    %cst_8 = arith.constant 1.000000e-16 : f32
    %25 = vector.broadcast %cst_8 : f32 to vector<8x1xf32>
    %26 = arith.maximumf %9, %25 : vector<8x1xf32>
    %27 = math.rsqrt %26 : vector<8x1xf32>
    %cst_9 = arith.constant 1.000000e-16 : f32
    %28 = vector.broadcast %cst_9 : f32 to vector<8x1xf32>
    %29 = arith.maximumf %12, %28 : vector<8x1xf32>
    %30 = math.rsqrt %29 : vector<8x1xf32>
    %cst_10 = arith.constant 1.000000e-16 : f32
    %31 = vector.broadcast %cst_10 : f32 to vector<8x1xf32>
    %32 = arith.maximumf %15, %31 : vector<8x1xf32>
    %33 = math.rsqrt %32 : vector<8x1xf32>
    %34 = arith.mulf %27, %30 : vector<8x1xf32>
    %35 = arith.mulf %18, %34 : vector<8x1xf32>
    %36 = arith.mulf %27, %33 : vector<8x1xf32>
    %37 = arith.mulf %21, %36 : vector<8x1xf32>
    %38 = arith.mulf %30, %33 : vector<8x1xf32>
    %39 = arith.mulf %24, %38 : vector<8x1xf32>
    %40 = arith.subf %35, %37 : vector<8x1xf32>
    %41 = arith.negf %40 : vector<8x1xf32>
    %42 = math.exp %41 : vector<8x1xf32>
    %cst_11 = arith.constant 1.000000e+00 : f32
    %43 = vector.broadcast %cst_11 : f32 to vector<8x1xf32>
    %44 = arith.addf %43, %42 : vector<8x1xf32>
    %45 = arith.divf %43, %44 : vector<8x1xf32>
    %cst_12 = arith.constant 1.000000e+00 : f32
    %46 = vector.broadcast %cst_12 : f32 to vector<8x1xf32>
    %47 = arith.subf %46, %45 : vector<8x1xf32>
    %48 = vector.broadcast %45 : vector<8x1xf32> to vector<8x128xf32>
    %49 = arith.mulf %48, %5 : vector<8x128xf32>
    %50 = arith.addf %4, %49 : vector<8x128xf32>
    %51 = vector.broadcast %47 : vector<8x1xf32> to vector<8x128xf32>
    %52 = arith.mulf %51, %6 : vector<8x128xf32>
    %53 = arith.addf %50, %52 : vector<8x128xf32>
    %c0_13 = arith.constant 0 : index
    %c0_14 = arith.constant 0 : index
    %54 = vector.load %arg3[%c0_13, %c0_14] : memref<8x384xf32, #tpu.memory_space<vmem>>, vector<8x128xf32>
    tpu.vector_store %arg3[%c0_13, %c0_14], %53 {strides = array<i32>} : memref<8x384xf32, #tpu.memory_space<vmem>>, vector<8x128xf32>,
    %55 = arith.subf %35, %39 : vector<8x1xf32>
    %56 = arith.negf %55 : vector<8x1xf32>
    %57 = math.exp %56 : vector<8x1xf32>
    %cst_15 = arith.constant 1.000000e+00 : f32
    %58 = vector.broadcast %cst_15 : f32 to vector<8x1xf32>
    %59 = arith.addf %58, %57 : vector<8x1xf32>
    %60 = arith.divf %58, %59 : vector<8x1xf32>
    %cst_16 = arith.constant 1.000000e+00 : f32
    %61 = vector.broadcast %cst_16 : f32 to vector<8x1xf32>
    %62 = arith.subf %61, %60 : vector<8x1xf32>
    %63 = vector.broadcast %60 : vector<8x1xf32> to vector<8x128xf32>
    %64 = arith.mulf %63, %4 : vector<8x128xf32>
    %65 = arith.addf %5, %64 : vector<8x128xf32>
    %66 = vector.broadcast %62 : vector<8x1xf32> to vector<8x128xf32>
    %67 = arith.mulf %66, %6 : vector<8x128xf32>
    %68 = arith.addf %65, %67 : vector<8x128xf32>
    %c0_17 = arith.constant 0 : index
    %c128 = arith.constant 128 : index
    %69 = vector.load %arg3[%c0_17, %c128] : memref<8x384xf32, #tpu.memory_space<vmem>>, vector<8x128xf32>
    tpu.vector_store %arg3[%c0_17, %c128], %68 {strides = array<i32>} : memref<8x384xf32, #tpu.memory_space<vmem>>, vector<8x128xf32>,
    %70 = arith.subf %37, %39 : vector<8x1xf32>
    %71 = arith.negf %70 : vector<8x1xf32>
    %72 = math.exp %71 : vector<8x1xf32>
    %cst_18 = arith.constant 1.000000e+00 : f32
    %73 = vector.broadcast %cst_18 : f32 to vector<8x1xf32>
    %74 = arith.addf %73, %72 : vector<8x1xf32>
    %75 = arith.divf %73, %74 : vector<8x1xf32>
    %cst_19 = arith.constant 1.000000e+00 : f32
    %76 = vector.broadcast %cst_19 : f32 to vector<8x1xf32>
    %77 = arith.subf %76, %75 : vector<8x1xf32>
    %78 = vector.broadcast %75 : vector<8x1xf32> to vector<8x128xf32>
    %79 = arith.mulf %78, %4 : vector<8x128xf32>
    %80 = arith.addf %6, %79 : vector<8x128xf32>
    %81 = vector.broadcast %77 : vector<8x1xf32> to vector<8x128xf32>
    %82 = arith.mulf %81, %5 : vector<8x128xf32>
    %83 = arith.addf %80, %82 : vector<8x128xf32>
    %c0_20 = arith.constant 0 : index
    %c256 = arith.constant 256 : index
    %84 = vector.load %arg3[%c0_20, %c256] : memref<8x384xf32, #tpu.memory_space<vmem>>, vector<8x128xf32>
    tpu.vector_store %arg3[%c0_20, %c256], %83 {strides = array<i32>} : memref<8x384xf32, #tpu.memory_space<vmem>>, vector<8x128xf32>,
    return
  }
  func.func @transform_0(%arg0: i32) -> (i32, i32) {
    %c0_i32 = arith.constant 0 : i32
    %c0_i32_0 = arith.constant 0 : i32
    return %arg0, %c0_i32 : i32, i32
  }
  func.func @transform_1(%arg0: i32) -> (i32, i32) {
    %c0_i32 = arith.constant 0 : i32
    %c0_i32_0 = arith.constant 0 : i32
    %c0_i32_1 = arith.constant 0 : i32
    return %c0_i32, %c0_i32_0 : i32, i32
  }
  func.func @transform_2(%arg0: i32) -> (i32, i32) {
    %c0_i32 = arith.constant 0 : i32
    %c0_i32_0 = arith.constant 0 : i32
    return %arg0, %c0_i32 : i32, i32
  }
}

</mosaic_0001>

<bundles_post_ra>
// kernel: tpu_custom_call.1
= control target key start
LH: loop header
LB: loop body
LE: loop exit
PB: predicated region body
PF: predicated region fallthrough
CT: control target
= control target key end

     0   :  { %7 = vsyncpa [#allocation3], 0  ;;  %s288_s0 = inlined_call_operand.hbm [shape: f32[8,384], index: 0, kind: input, shape index: {}]   ;;  %s289_s1 = inlined_call_operand.hbm [shape: f32[1,384], index: 1, kind: input, shape index: {}]   ;;  %s290_s2 = inlined_call_operand.hbm [shape: f32[8,384], index: 2, kind: output, shape index: {}]  }
   0x1   :  { %8 = vsyncpa [#allocation6], 0 }
   0x2   :  { %9 = vsyncpa [#allocation4], 0  ;;  %s234_s9 = smov [#allocation2]   ;;  %s235_s11 = smov [#allocation5]  }
   0x3   :  { %s16_s10 = sshll.u32 %s234_s9, 4  ;;  %s26_s12 = sshll.u32 %s235_s11, 4  ;;  %s17_s10 = int_to_ptr.vmem [resolvable:$true] %s16_s10  ;;  %s27_s12 = int_to_ptr.vmem [resolvable:$true] %s26_s12 }
   0x4   :  { %s176_s13 = scalar_lea.vmem %s17_s10, 384  ;;  %p181_p1 = scmp.lt.s32.totalorder %s17_s10, %s17_s10 }
   0x5   :  { %p177_p0 = scmp.ne.s32.totalorder %s17_s10, %s176_s13  ;;  %p182_p2 = scmp.lt.s32.totalorder %s176_s13, %s176_s13 }
   0x7   :  { %p183_p3 = por %p182_p2, %p181_p1 }
   0x9   :  { %p184_p4 = pnand %p183_p3, %p177_p0 }
   0xb   :  { %187 = shalt.err (!%p184_p4)
}
   0xc   :  { %19 = dma.hbm_to_vmem [thread:$0]  %s288_s0, 384, %s17_s10, [#allocation3]  }
   0xd   :  { %s196_s16 = scalar_lea.vmem %s27_s12, 48  ;;  %s200_s17 = scalar_lea.vmem %s27_s12, 64 }
   0xe   :  { %p197_p5 = scmp.ne.s32.totalorder %s27_s12, %s196_s16  ;;  %p201_p6 = scmp.lt.s32.totalorder %s27_s12, %s27_s12 }
   0xf   :  { %p202_p7 = scmp.lt.s32.totalorder %s200_s17, %s196_s16 }
  0x11   :  { %p203_p8 = por %p202_p7, %p201_p6 }
  0x13   :  { %p204_p9 = pnand %p203_p8, %p197_p5 }
  0x15   :  { %207 = shalt.err (!%p204_p9)
}
  0x16   :  { %29 = dma.hbm_to_vmem [thread:$0]  %s289_s1, 48, %s27_s12, [#allocation6]  }
  0x17   :  { %228 = dma.done.wait [#allocation3], 384  }
  0x18   :  { %229 = vsyncadd [#allocation3], 4294966912 }
  0x19   :  { %230 = dma.done.wait [#allocation6], 48  }
  0x1a   :  { %231 = vsyncadd [#allocation6], 4294967248  ;;  %v41_v0 = vlaneseq  ;;  %v38_v5 = vld [vmem:[#allocation2 + $0x10] sm:$0xff]  ;;  %v39_v6 = vld [vmem:[#allocation5] sm:$0x7]  ;;  %s236_s0 = smov [#allocation7]  }
  0x1b   :  { %v36_v7 = vld [vmem:[#allocation2] sm:$0xff]  ;;  %v37_v10 = vld [vmem:[#allocation2 + $0x8] sm:$0xff]  ;;  %s134_s1 = sshll.u32 %s236_s0, 4  ;;  %s135_s1 = int_to_ptr.vmem [resolvable:$true] %s134_s1 }
  0x1c   :  { %v42_v1 = vshrl.u32 %v41_v0, 7  ;;  %s208_s20 = scalar_lea.vmem %s135_s1, 384  ;;  %p213_p11 = scmp.lt.s32.totalorder %s135_s1, %s135_s1 }
  0x1d   :  { %p209_p10 = scmp.ne.s32.totalorder %s135_s1, %s208_s20  ;;  %p214_p12 = scmp.lt.s32.totalorder %s208_s20, %s208_s20 }
  0x1e   :  { %v51_v2 = vsub.s32 2, %v42_v1  ;;  %v43_v3 = vsub.s32 0, %v42_v1  ;;  %v47_v4 = vsub.s32 1, %v42_v1 }
  0x1f   :  { %p215_p13 = por %p214_p12, %p213_p11 }
  0x20   :  { %v52_v8 = vrot.slane %v39_v6, %v51_v2  ;;  %v44_v9 = vrot.slane %v39_v6, %v43_v3  ;;  %v48_v11 = vrot.slane %v39_v6, %v47_v4 }
  0x21   :  { %p216_p0 = pnand %p215_p13, %p209_p10 }
  0x22   :  { %v258_v12 = vadd.f32 %v52_v8, %v38_v5  ;;  %v260_v13 = vadd.f32 %v44_v9, %v36_v7  ;;  %v262_v14 = vadd.f32 %v48_v11, %v37_v10 }
  0x24   :  { %v65_v15 = vmul.f32 %v258_v12, %v258_v12  ;;  %v59_v16 = vmul.f32 %v260_v13, %v260_v13  ;;  %v62_v17 = vmul.f32 %v262_v14, %v262_v14  ;;  %v68_v18 = vmul.f32 %v262_v14, %v260_v13 }
  0x25   :  { %v71_v19 = vmul.f32 %v258_v12, %v260_v13  ;;  %v74_v20 = vmul.f32 %v258_v12, %v262_v14 }
  0x26   :  { %66 = vadd.xlane.f32.xlu1 %v65_v15  ;;  %60 = vadd.xlane.f32.xlu0 %v59_v16 }
  0x2a   :  { %63 = vadd.xlane.f32.xlu0 %v62_v17  ;;  %69 = vadd.xlane.f32.xlu1 %v68_v18 }
  0x2e   :  { %72 = vadd.xlane.f32.xlu0 %v71_v19  ;;  %75 = vadd.xlane.f32.xlu1 %v74_v20 }
  0xaf   :  { %v67_v21 = vpop.xlane.xlu1 %66  ;;  %v61_v22 = vpop.xlane.xlu0 %60 }
  0xb0   :  { %v81_v23 = vmax.f32 %v67_v21, 1e-16  ;;  %v77_v24 = vmax.f32 %v61_v22, 1e-16 }
  0xb2   :  { %150 = vrsqrt.f32 %v81_v23 }
  0xb3   :  { %152 = vrsqrt.f32 %v77_v24  ;;  %v64_v25 = vpop.xlane.xlu0 %63  ;;  %v70_v27 = vpop.xlane.xlu1 %69 }
  0xb4   :  { %v79_v26 = vmax.f32 %v64_v25, 1e-16 }
  0xb6   :  { %154 = vrsqrt.f32 %v79_v26 }
  0xb7   :  { %v73_v32 = vpop.xlane.xlu0 %72  ;;  %v76_v33 = vpop.xlane.xlu1 %75 }
  0xbf   :  { %v151_v28 = vpop.eup %150 }
  0xc0   :  { %v153_v29 = vpop.eup %152 }
  0xc1   :  { %v85_v30 = vmul.f32 %v153_v29, %v151_v28 }
  0xc3   :  { %v155_v31 = vpop.eup %154  ;;  %v86_v37 = vmul.f32 %v85_v30, %v73_v32 }
  0xc4   :  { %v83_v34 = vmul.f32 %v155_v31, %v153_v29  ;;  %v87_v35 = vmul.f32 %v155_v31, %v151_v28 }
  0xc6   :  { %v84_v36 = vmul.f32 %v83_v34, %v70_v27  ;;  %v88_v38 = vmul.f32 %v87_v35, %v76_v33 }
  0xc8   :  { %v89_v39 = vsub.f32 %v84_v36, %v86_v37  ;;  %v102_v40 = vsub.f32 %v84_v36, %v88_v38  ;;  %v115_v41 = vsub.f32 %v86_v37, %v88_v38 }
  0xca   :  { %v144_v42 = vmul.f32 -1.442695, %v89_v39  ;;  %v145_v43 = vmul.f32 -1.442695, %v102_v40  ;;  %v146_v44 = vmul.f32 -1.442695, %v115_v41 }
  0xcc   :  { %156 = vpow2.f32 %v144_v42 }
  0xcd   :  { %158 = vpow2.f32 %v145_v43 }
  0xce   :  { %160 = vpow2.f32 %v146_v44 }
  0xd9   :  { %v157_v45 = vpop.eup %156 }
  0xda   :  { %v159_v46 = vpop.eup %158  ;;  %v93_v47 = vadd.f32 1.0, %v157_v45 }
  0xdb   :  { %v161_v48 = vpop.eup %160  ;;  %v106_v49 = vadd.f32 1.0, %v159_v46 }
  0xdc   :  { %162 = vrcp.f32 %v93_v47  ;;  %v119_v50 = vadd.f32 1.0, %v161_v48 }
  0xdd   :  { %164 = vrcp.f32 %v106_v49 }
  0xde   :  { %166 = vrcp.f32 %v119_v50 }
  0xe9   :  { %v163_v51 = vpop.eup %162 }
  0xea   :  { %v165_v52 = vpop.eup %164  ;;  %v96_v53 = vsub.f32 1.0, %v163_v51  ;;  %v97_v54 = vmul.f32 %v163_v51, %v262_v14 }
  0xeb   :  { %v167_v55 = vpop.eup %166  ;;  %v109_v56 = vsub.f32 1.0, %v165_v52  ;;  %v110_v57 = vmul.f32 %v165_v52, %v260_v13 }
  0xec   :  { %v98_v58 = vadd.f32 %v97_v54, %v260_v13  ;;  %v99_v59 = vmul.f32 %v96_v53, %v258_v12  ;;  %v122_v60 = vsub.f32 1.0, %v167_v55  ;;  %v123_v61 = vmul.f32 %v167_v55, %v260_v13 }
  0xed   :  { %v111_v62 = vadd.f32 %v110_v57, %v262_v14  ;;  %v112_v63 = vmul.f32 %v109_v56, %v258_v12 }
  0xee   :  { %v100_v0 = vadd.f32 %v99_v59, %v98_v58  ;;  %v124_v1 = vadd.f32 %v123_v61, %v258_v12  ;;  %v125_v2 = vmul.f32 %v122_v60, %v262_v14 }
  0xef   :  { %v113_v3 = vadd.f32 %v112_v63, %v111_v62 }
  0xf0   :  { %101 = vst [vmem:[#allocation7] sm:$0xff] %v100_v0  ;;  %v126_v4 = vadd.f32 %v125_v2, %v124_v1 }
  0xf1   :  { %114 = vst [vmem:[#allocation7 + $0x8] sm:$0xff] %v113_v3 }
  0xf2   :  { %127 = vst [vmem:[#allocation7 + $0x10] sm:$0xff] %v126_v4 }
  0xf3   :  { %219 = shalt.err (!%p216_p0)
}
  0xf4   :  { %137 = dma.vmem_to_hbm [thread:$0]  %s135_s1, 384, %s290_s2, [#allocation4]  }
  0xf5   :  { %232 = dma.done.wait [#allocation4], 384  }
  0xf6   :  { %233 = vsyncadd [#allocation4], 4294966912 }
  0xf7   :  { %141 = vsyncpa [#allocation3], 1 }
  0xf8   :  { %142 = vsyncpa [#allocation6], 1 }
  0xf9   :  { %143 = vsyncpa [#allocation4], 1 }

</bundles_post_ra>
